<compile_context>
chip_gen: v7x
topology: tpu7x:2x2x1
jax: 0.10.0
libtpu: 0.0.40
codegen_flags: <defaults>
</compile_context>

<pallas_src>
import functools

import jax
import jax.numpy as jnp
from jax.experimental import pallas as pl
from jax.experimental.pallas import tpu as pltpu

EPS = 1e-5
LANE = 128


def _round_up(n, m):
    return ((n + m - 1) // m) * m


def _deep_kernel(num_layers, batch, matmul_dtype, x_ref, *refs):
    """Fused [Linear(no bias) -> BatchNorm1d(affine=False) -> ReLU] x num_layers."""
    w_refs = refs[:num_layers]
    o_ref = refs[num_layers]
    inv_b = jnp.float32(1.0 / batch)

    h = x_ref[...]
    for w_ref in w_refs:
        # Linear (bias dropped: exactly cancelled by the mean subtraction below).
        y = jnp.dot(h.astype(matmul_dtype), w_ref[...].astype(matmul_dtype),
                    preferred_element_type=jnp.float32)
        # One-pass BN stats: two independent sublane reductions off the matmul result.
        s1 = jnp.sum(y, axis=0, keepdims=True)
        s2 = jnp.sum(y * y, axis=0, keepdims=True)
        mean = s1 * inv_b
        var = jnp.maximum(s2 * inv_b - mean * mean, 0.0)  # biased var, clamped >= 0
        # Normalize (rsqrt goes to the EUP slot) + ReLU.
        h = jnp.maximum((y - mean) * jax.lax.rsqrt(var + EPS), 0.0)
    o_ref[...] = h.astype(o_ref.dtype)


def deep_forward(x, weights, *, matmul_dtype=jnp.float32):
    """x: [B, D_in] f32.  weights: list of [d_in, d_out] f32 (pre-transposed).

    Biases are intentionally not taken: BatchNorm1d(affine=False) after each Linear
    makes the forward pass bias-invariant.
    """
    B, d_in = x.shape
    num_layers = len(weights)

    # Lane-dense padding of every feature dim to a multiple of 128 (zeros stay zeros
    # through matmul -> BN -> ReLU, so this is numerically inert).
    d_in_p = _round_up(d_in, LANE)
    x_p = jnp.pad(x, ((0, 0), (0, d_in_p - d_in)))
    w_p = []
    prev, prev_p = d_in, d_in_p
    for w in weights:
        di, do = w.shape
        assert di == prev, "layer dims must chain"
        do_p = _round_up(do, LANE)
        w_p.append(jnp.pad(w, ((0, prev_p - di), (0, do_p - do))))
        prev, prev_p = do, do_p
    d_out, d_out_p = prev, prev_p

    kernel = functools.partial(_deep_kernel, num_layers, B, matmul_dtype)

    flops = 2 * B * sum(w.shape[0] * w.shape[1] for w in w_p)
    transcendentals = sum(w.shape[1] for w in w_p)  # one rsqrt per feature per layer
    bytes_accessed = 4 * (x_p.size + sum(w.size for w in w_p) + B * d_out_p)

    out_p = pl.pallas_call(
        kernel,
        out_shape=jax.ShapeDtypeStruct((B, d_out_p), jnp.float32),
        in_specs=[pl.BlockSpec(x_p.shape, lambda: (0, 0))]
        + [pl.BlockSpec(w.shape, lambda: (0, 0)) for w in w_p],
        out_specs=pl.BlockSpec((B, d_out_p), lambda: (0, 0)),
        cost_estimate=pl.CostEstimate(flops=flops,
                                      transcendentals=transcendentals,
                                      bytes_accessed=bytes_accessed),
        compiler_params=pltpu.CompilerParams(vmem_limit_bytes=32 * 1024 * 1024),
    )(x_p, *w_p)

    return out_p[:, :d_out]


def make_params(key, input_dim, deep_layers):
    """PyTorch-default-init Linear params; weights stored as [d_in, d_out]."""
    dims = [input_dim] + list(deep_layers)
    params = []
    for d_in, d_out in zip(dims[:-1], dims[1:]):
        key, kw, kb = jax.random.split(key, 3)
        bound = 1.0 / (d_in ** 0.5)
        w = jax.random.uniform(kw, (d_in, d_out), jnp.float32, -bound, bound)
        b = jax.random.uniform(kb, (1, d_out), jnp.float32, -bound, bound)
        params.append((w, b))
    return params


def reference_forward(x, params):
    """Pure-JAX reference with the *original* semantics including the Linear bias
    (which the BN mean-subtraction cancels) and two-pass BN stats."""
    h = x
    for w, b in params:
        y = h @ w + b
        mean = jnp.mean(y, axis=0, keepdims=True)
        var = jnp.mean((y - mean) ** 2, axis=0, keepdims=True)
        y = (y - mean) / jnp.sqrt(var + EPS)
        h = jnp.maximum(y, 0.0)
    return h


if __name__ == "__main__":
    # Deep(input_dim=32, deep_layers=[64, 32]) on a batch of 8.
    batch, input_dim = 8, 32
    deep_layers = [64, 32]

    key = jax.random.PRNGKey(0)
    key, kx = jax.random.split(key)
    x = jax.random.normal(kx, (batch, input_dim), jnp.float32)

    params = make_params(key, input_dim, deep_layers)
    weights = [w for (w, _b) in params]

    # f32 MXU operands: matches the PyTorch f32 forward tightly.
    out = jax.block_until_ready(deep_forward(x, weights))
    ref = reference_forward(x, params)  # reference includes the bias -> BN cancels it
    assert out.shape == (batch, deep_layers[-1])
    assert jnp.allclose(out, ref, atol=1e-3, rtol=1e-3), float(jnp.max(jnp.abs(out - ref)))

    # bf16 MXU-operand variant (v6e/v7x fast path); BN math stays f32.
    out_bf16 = jax.block_until_ready(deep_forward(x, weights, matmul_dtype=jnp.bfloat16))
    assert out_bf16.shape == (batch, deep_layers[-1])
    assert bool(jnp.isfinite(out_bf16).all())
    assert jnp.allclose(out_bf16, ref, atol=0.25, rtol=0.25)

    print("KERNEL_OK")
</pallas_src>

<mosaic_0001>
module attributes {stable_mosaic.version = 11 : i64} {
  func.func @_deep_kernel(%arg0: memref<8x128xf32, #tpu.memory_space<vmem>>, %arg1: memref<128x128xf32, #tpu.memory_space<vmem>>, %arg2: memref<128x128xf32, #tpu.memory_space<vmem>>, %arg3: memref<8x128xf32, #tpu.memory_space<vmem>>) attributes {dimension_semantics = [], scalar_prefetch = 0 : i64, scratch_operands = 0 : i64, tpu.core_type = #tpu.core_type<tc>} {
    %c0 = arith.constant 0 : index
    %c0_0 = arith.constant 0 : index
    %0 = vector.load %arg0[%c0, %c0_0] : memref<8x128xf32, #tpu.memory_space<vmem>>, vector<8x128xf32>
    %c0_1 = arith.constant 0 : index
    %c0_2 = arith.constant 0 : index
    %1 = vector.load %arg1[%c0_1, %c0_2] : memref<128x128xf32, #tpu.memory_space<vmem>>, vector<128x128xf32>
    %cst = arith.constant dense<0.000000e+00> : vector<8x128xf32>
    %2 = tpu.matmul %0, %1, %cst {dimension_numbers = #tpu.dot_dimension_numbers<[1], [0], [0], [1], [0, 0, 1, 1], [], []>} : vector<8x128xf32>, vector<128x128xf32>, vector<8x128xf32> -> vector<8x128xf32>
    %cst_3 = arith.constant dense<0.000000e+00> : vector<128xf32>
    %3 = vector.multi_reduction <add>, %2, %cst_3 [0] : vector<8x128xf32> to vector<128xf32>
    %4 = vector.shape_cast %3 : vector<128xf32> to vector<1x128xf32>
    %5 = arith.mulf %2, %2 : vector<8x128xf32>
    %cst_4 = arith.constant dense<0.000000e+00> : vector<128xf32>
    %6 = vector.multi_reduction <add>, %5, %cst_4 [0] : vector<8x128xf32> to vector<128xf32>
    %7 = vector.shape_cast %6 : vector<128xf32> to vector<1x128xf32>
    %cst_5 = arith.constant 1.250000e-01 : f32
    %8 = vector.broadcast %cst_5 : f32 to vector<1x128xf32>
    %9 = arith.mulf %4, %8 : vector<1x128xf32>
    %cst_6 = arith.constant 1.250000e-01 : f32
    %10 = vector.broadcast %cst_6 : f32 to vector<1x128xf32>
    %11 = arith.mulf %7, %10 : vector<1x128xf32>
    %12 = arith.mulf %9, %9 : vector<1x128xf32>
    %13 = arith.subf %11, %12 : vector<1x128xf32>
    %cst_7 = arith.constant 0.000000e+00 : f32
    %14 = vector.broadcast %cst_7 : f32 to vector<1x128xf32>
    %15 = arith.maximumf %13, %14 : vector<1x128xf32>
    %16 = vector.broadcast %9 : vector<1x128xf32> to vector<8x128xf32>
    %17 = arith.subf %2, %16 : vector<8x128xf32>
    %cst_8 = arith.constant 9.99999974E-6 : f32
    %18 = vector.broadcast %cst_8 : f32 to vector<1x128xf32>
    %19 = arith.addf %15, %18 : vector<1x128xf32>
    %20 = math.rsqrt %19 : vector<1x128xf32>
    %21 = vector.broadcast %20 : vector<1x128xf32> to vector<8x128xf32>
    %22 = arith.mulf %17, %21 : vector<8x128xf32>
    %cst_9 = arith.constant 0.000000e+00 : f32
    %23 = vector.broadcast %cst_9 : f32 to vector<8x128xf32>
    %24 = arith.maximumf %22, %23 : vector<8x128xf32>
    %c0_10 = arith.constant 0 : index
    %c0_11 = arith.constant 0 : index
    %25 = vector.load %arg2[%c0_10, %c0_11] : memref<128x128xf32, #tpu.memory_space<vmem>>, vector<128x128xf32>
    %cst_12 = arith.constant dense<0.000000e+00> : vector<8x128xf32>
    %26 = tpu.matmul %24, %25, %cst_12 {dimension_numbers = #tpu.dot_dimension_numbers<[1], [0], [0], [1], [0, 0, 1, 1], [], []>} : vector<8x128xf32>, vector<128x128xf32>, vector<8x128xf32> -> vector<8x128xf32>
    %cst_13 = arith.constant dense<0.000000e+00> : vector<128xf32>
    %27 = vector.multi_reduction <add>, %26, %cst_13 [0] : vector<8x128xf32> to vector<128xf32>
    %28 = vector.shape_cast %27 : vector<128xf32> to vector<1x128xf32>
    %29 = arith.mulf %26, %26 : vector<8x128xf32>
    %cst_14 = arith.constant dense<0.000000e+00> : vector<128xf32>
    %30 = vector.multi_reduction <add>, %29, %cst_14 [0] : vector<8x128xf32> to vector<128xf32>
    %31 = vector.shape_cast %30 : vector<128xf32> to vector<1x128xf32>
    %cst_15 = arith.constant 1.250000e-01 : f32
    %32 = vector.broadcast %cst_15 : f32 to vector<1x128xf32>
    %33 = arith.mulf %28, %32 : vector<1x128xf32>
    %cst_16 = arith.constant 1.250000e-01 : f32
    %34 = vector.broadcast %cst_16 : f32 to vector<1x128xf32>
    %35 = arith.mulf %31, %34 : vector<1x128xf32>
    %36 = arith.mulf %33, %33 : vector<1x128xf32>
    %37 = arith.subf %35, %36 : vector<1x128xf32>
    %cst_17 = arith.constant 0.000000e+00 : f32
    %38 = vector.broadcast %cst_17 : f32 to vector<1x128xf32>
    %39 = arith.maximumf %37, %38 : vector<1x128xf32>
    %40 = vector.broadcast %33 : vector<1x128xf32> to vector<8x128xf32>
    %41 = arith.subf %26, %40 : vector<8x128xf32>
    %cst_18 = arith.constant 9.99999974E-6 : f32
    %42 = vector.broadcast %cst_18 : f32 to vector<1x128xf32>
    %43 = arith.addf %39, %42 : vector<1x128xf32>
    %44 = math.rsqrt %43 : vector<1x128xf32>
    %45 = vector.broadcast %44 : vector<1x128xf32> to vector<8x128xf32>
    %46 = arith.mulf %41, %45 : vector<8x128xf32>
    %cst_19 = arith.constant 0.000000e+00 : f32
    %47 = vector.broadcast %cst_19 : f32 to vector<8x128xf32>
    %48 = arith.maximumf %46, %47 : vector<8x128xf32>
    %c0_20 = arith.constant 0 : index
    %c0_21 = arith.constant 0 : index
    %49 = vector.load %arg3[%c0_20, %c0_21] : memref<8x128xf32, #tpu.memory_space<vmem>>, vector<8x128xf32>
    tpu.vector_store %arg3[%c0_20, %c0_21], %48 {strides = array<i32>} : memref<8x128xf32, #tpu.memory_space<vmem>>, vector<8x128xf32>,
    return
  }
}

</mosaic_0001>

<bundles_post_ra>
// kernel: tpu_custom_call.1
= control target key start
LH: loop header
LB: loop body
LE: loop exit
PB: predicated region body
PF: predicated region fallthrough
CT: control target
= control target key end

     0   :  { %8 = vsyncpa [#allocation3], 0  ;;  %s648_s0 = inlined_call_operand.hbm [shape: f32[8,128], index: 0, kind: input, shape index: {}]   ;;  %s649_s1 = inlined_call_operand.hbm [shape: f32[128,128], index: 1, kind: input, shape index: {}]   ;;  %s650_s2 = inlined_call_operand.hbm [shape: f32[128,128], index: 2, kind: input, shape index: {}]   ;;  %s651_s3 = inlined_call_operand.hbm [shape: f32[8,128], index: 3, kind: output, shape index: {}]  }
   0x1   :  { %9 = vsyncpa [#allocation6], 0 }
   0x2   :  { %10 = vsyncpa [#allocation4], 0  ;;  %s549_s12 = smov [#allocation5]   ;;  %s455_s16 = scalar_lea.hbm %s649_s1, 2048 }
   0x3   :  { %s26_s13 = sshll.u32 %s549_s12, 4  ;;  %p456_p0 = scmp.ne.s32.totalorder %s649_s1, %s455_s16  ;;  %s27_s13 = int_to_ptr.vmem [resolvable:$true] %s26_s13 }
   0x4   :  { %p459_p1 = scmp.lt.u32.totalorder %s455_s16, %s649_s1 }
   0x6   :  { %p461_p2 = pnand %p459_p1, %p456_p0 }
   0x8   :  { %464 = shalt.err (!%p461_p2)
}
   0x9   :  { %s465_s21 = scalar_lea.vmem %s27_s13, 2048  ;;  %p470_p4 = scmp.lt.s32.totalorder %s27_s13, %s27_s13 }
   0xa   :  { %p466_p3 = scmp.ne.s32.totalorder %s27_s13, %s465_s21  ;;  %p471_p5 = scmp.lt.s32.totalorder %s465_s21, %s465_s21 }
   0xc   :  { %p472_p6 = por %p471_p5, %p470_p4 }
   0xe   :  { %p473_p7 = pnand %p472_p6, %p466_p3 }
  0x10   :  { %476 = shalt.err (!%p473_p7)
}
  0x11   :  { %s550_s22 = smov 128   ;;  %s551_s23 = smov 8  }
  0x12   :  { %32 = dma.hbm_to_vmem [thread:$0]  %s649_s1, 2048, %s27_s13, [#allocation6], %s550_s22, %s550_s22, %s551_s23  }
  0x13   :  { %s552_s26 = smov [#allocation2]   ;;  %s553_s28 = smov [#allocation7]  }
  0x14   :  { %s17_s27 = sshll.u32 %s552_s26, 4  ;;  %s38_s29 = sshll.u32 %s553_s28, 4  ;;  %s18_s27 = int_to_ptr.vmem [resolvable:$true] %s17_s27  ;;  %s39_s29 = int_to_ptr.vmem [resolvable:$true] %s38_s29 }
  0x15   :  { %s477_s5 = scalar_lea.hbm %s648_s0, 128 }
  0x16   :  { %p478_p8 = scmp.ne.s32.totalorder %s648_s0, %s477_s5  ;;  %p481_p9 = scmp.lt.u32.totalorder %s477_s5, %s648_s0 }
  0x18   :  { %p483_p10 = pnand %p481_p9, %p478_p8 }
  0x1a   :  { %486 = shalt.err (!%p483_p10)
}
  0x1b   :  { %s487_s1 = scalar_lea.vmem %s18_s27, 128  ;;  %p492_p12 = scmp.lt.s32.totalorder %s18_s27, %s18_s27 }
  0x1c   :  { %p488_p11 = scmp.ne.s32.totalorder %s18_s27, %s487_s1  ;;  %p493_p13 = scmp.lt.s32.totalorder %s487_s1, %s487_s1 }
  0x1e   :  { %p494_p0 = por %p493_p13, %p492_p12 }
  0x20   :  { %p495_p1 = pnand %p494_p0, %p488_p11 }
  0x22   :  { %498 = shalt.err (!%p495_p1)
}
  0x23   :  { %20 = dma.hbm_to_vmem [thread:$0]  %s648_s0, 128, %s18_s27, [#allocation3]  }
  0x24   :  { %s499_s14 = scalar_lea.hbm %s650_s2, 2048 }
  0x25   :  { %p500_p2 = scmp.ne.s32.totalorder %s650_s2, %s499_s14  ;;  %p503_p3 = scmp.lt.u32.totalorder %s499_s14, %s650_s2 }
  0x27   :  { %p505_p4 = pnand %p503_p3, %p500_p2 }
  0x29   :  { %508 = shalt.err (!%p505_p4)
}
  0x2a   :  { %s509_s19 = scalar_lea.vmem %s39_s29, 2048  ;;  %p514_p6 = scmp.lt.s32.totalorder %s39_s29, %s39_s29 }
  0x2b   :  { %p510_p5 = scmp.ne.s32.totalorder %s39_s29, %s509_s19  ;;  %p515_p7 = scmp.lt.s32.totalorder %s509_s19, %s509_s19 }
  0x2d   :  { %p516_p8 = por %p515_p7, %p514_p6 }
  0x2f   :  { %p517_p9 = pnand %p516_p8, %p510_p5 }
  0x31   :  { %520 = shalt.err (!%p517_p9)
}
  0x32   :  { %44 = dma.hbm_to_vmem [thread:$0]  %s650_s2, 2048, %s39_s29, [#allocation6], %s550_s22, %s550_s22, %s551_s23  }
  0x33   :  { %543 = dma.done.wait [#allocation3], 128  }
  0x34   :  { %544 = vsyncadd [#allocation3], 4294967168 }
  0x35   :  { %545 = dma.done.wait [#allocation6], 4096  }
  0x36   :  { %546 = vsyncadd [#allocation6], 4294963200  ;;  %v554_v0 = vmov 0.0|0.0   ;;  %vm555_vm0 = vmmov 0   ;;  %v556_v1 = vmov 0.0   ;;  %v55_v2 = vld [vmem:[#allocation5] sm:$0xff] }
  0x37   :  { %394 = vmatprep.subr.bf16.mxu0 %v554_v0  ;;  %356 = vmatprep.mubr.msk.f32.mxu0 %vm555_vm0, %v556_v1  ;;  %v56_v3 = vld [vmem:[#allocation5 + $0x8] sm:$0xff]  ;;  %v57_v4 = vld [vmem:[#allocation5 + $0x10] sm:$0xff]  ;;  %v58_v6 = vld [vmem:[#allocation5 + $0x18] sm:$0xff]  ;;  %s557_s2 = smov [#allocation8]  }
  0x38   :  { %418 = vmatprep.subr.bf16.mxu1 %v554_v0  ;;  %391 = vmatprep.mubr.msk.f32.mxu1 %vm555_vm0, %v556_v1  ;;  %v395_v5 = vpack.c.bf16 %v56_v3, %v55_v2  ;;  %v398_v7 = vpack.c.bf16 %v58_v6, %v57_v4  ;;  %v59_v8 = vld [vmem:[#allocation5 + $0x20] sm:$0xff]  ;;  %v60_v9 = vld [vmem:[#allocation5 + $0x28] sm:$0xff]  ;;  %v61_v11 = vld [vmem:[#allocation5 + $0x30] sm:$0xff]  ;;  %s280_s21 = sshll.u32 %s557_s2, 4  ;;  %s281_s21 = int_to_ptr.vmem [resolvable:$true] %s280_s21 }
  0x39   :  { %v401_v10 = vpack.c.bf16 %v60_v9, %v59_v8  ;;  %v62_v12 = vld [vmem:[#allocation5 + $0x38] sm:$0xff]  ;;  %v63_v14 = vld [vmem:[#allocation5 + $0x40] sm:$0xff]  ;;  %v64_v15 = vld [vmem:[#allocation5 + $0x48] sm:$0xff]  ;;  %s521_s22 = scalar_lea.vmem %s281_s21, 128  ;;  %p526_p11 = scmp.lt.s32.totalorder %s281_s21, %s281_s21 }
  0x3a   :  { %396 = vmatpush3.bf16.msra.mxu0 %v395_v5  ;;  %v404_v13 = vpack.c.bf16 %v62_v12, %v61_v11  ;;  %v407_v16 = vpack.c.bf16 %v64_v15, %v63_v14  ;;  %v65_v17 = vld [vmem:[#allocation5 + $0x50] sm:$0xff]  ;;  %v66_v18 = vld [vmem:[#allocation5 + $0x58] sm:$0xff]  ;;  %v67_v20 = vld [vmem:[#allocation5 + $0x60] sm:$0xff]  ;;  %p522_p10 = scmp.ne.s32.totalorder %s281_s21, %s521_s22  ;;  %p527_p12 = scmp.lt.s32.totalorder %s521_s22, %s521_s22 }
  0x3b   :  { %397 = vmatprep.subr.bf16.mxu0 %v554_v0  ;;  %v410_v19 = vpack.c.bf16 %v66_v18, %v65_v17  ;;  %v68_v21 = vld [vmem:[#allocation5 + $0x68] sm:$0xff]  ;;  %v69_v23 = vld [vmem:[#allocation5 + $0x70] sm:$0xff]  ;;  %v70_v24 = vld [vmem:[#allocation5 + $0x78] sm:$0xff] }
  0x3c   :  { %v413_v22 = vpack.c.bf16 %v68_v21, %v67_v20  ;;  %v416_v25 = vpack.c.bf16 %v70_v24, %v69_v23  ;;  %v54_v26 = vld [vmem:[#allocation2] sm:$0xff]  ;;  %v164_v27 = vld [vmem:[#allocation7] sm:$0xff]  ;;  %v165_v28 = vld [vmem:[#allocation7 + $0x8] sm:$0xff]  ;;  %p528_p13 = por %p527_p12, %p526_p11 }
  0x3d   :  { %v419_v29 = vpack.c.bf16 %v165_v28, %v164_v27  ;;  %v166_v30 = vld [vmem:[#allocation7 + $0x10] sm:$0xff]  ;;  %v167_v31 = vld [vmem:[#allocation7 + $0x18] sm:$0xff]  ;;  %v168_v33 = vld [vmem:[#allocation7 + $0x20] sm:$0xff] }
  0x3e   :  { %399 = vmatpush3.bf16.msra.mxu0 %v398_v7  ;;  %v422_v32 = vpack.c.bf16 %v167_v31, %v166_v30  ;;  %v169_v34 = vld [vmem:[#allocation7 + $0x28] sm:$0xff]  ;;  %v170_v36 = vld [vmem:[#allocation7 + $0x30] sm:$0xff]  ;;  %v171_v37 = vld [vmem:[#allocation7 + $0x38] sm:$0xff]  ;;  %p529_p0 = pnand %p528_p13, %p522_p10 }
  0x3f   :  { %400 = vmatprep.subr.bf16.mxu0 %v554_v0  ;;  %420 = vmatpush3.bf16.msra.mxu1 %v419_v29  ;;  %v425_v35 = vpack.c.bf16 %v169_v34, %v168_v33  ;;  %v428_v38 = vpack.c.bf16 %v171_v37, %v170_v36  ;;  %v172_v39 = vld [vmem:[#allocation7 + $0x40] sm:$0xff]  ;;  %v173_v40 = vld [vmem:[#allocation7 + $0x48] sm:$0xff]  ;;  %v174_v42 = vld [vmem:[#allocation7 + $0x50] sm:$0xff] }
  0x40   :  { %421 = vmatprep.subr.bf16.mxu1 %v554_v0  ;;  %v431_v41 = vpack.c.bf16 %v173_v40, %v172_v39  ;;  %v175_v43 = vld [vmem:[#allocation7 + $0x58] sm:$0xff]  ;;  %v176_v45 = vld [vmem:[#allocation7 + $0x60] sm:$0xff]  ;;  %v177_v46 = vld [vmem:[#allocation7 + $0x68] sm:$0xff] }
  0x41   :  { %v434_v44 = vpack.c.bf16 %v175_v43, %v174_v42  ;;  %v437_v47 = vpack.c.bf16 %v177_v46, %v176_v45  ;;  %v178_v48 = vld [vmem:[#allocation7 + $0x70] sm:$0xff]  ;;  %v179_v49 = vld [vmem:[#allocation7 + $0x78] sm:$0xff] }
  0x42   :  { %402 = vmatpush3.bf16.msra.mxu0 %v401_v10  ;;  %v440_v50 = vpack.c.bf16 %v179_v49, %v178_v48 }
  0x43   :  { %403 = vmatprep.subr.bf16.mxu0 %v554_v0  ;;  %423 = vmatpush3.bf16.msra.mxu1 %v422_v32 }
  0x44   :  { %424 = vmatprep.subr.bf16.mxu1 %v554_v0 }
  0x46   :  { %405 = vmatpush3.bf16.msra.mxu0 %v404_v13 }
  0x47   :  { %406 = vmatprep.subr.bf16.mxu0 %v554_v0  ;;  %426 = vmatpush3.bf16.msra.mxu1 %v425_v35 }
  0x48   :  { %427 = vmatprep.subr.bf16.mxu1 %v554_v0 }
  0x4a   :  { %408 = vmatpush3.bf16.msra.mxu0 %v407_v16 }
  0x4b   :  { %409 = vmatprep.subr.bf16.mxu0 %v554_v0  ;;  %429 = vmatpush3.bf16.msra.mxu1 %v428_v38 }
  0x4c   :  { %430 = vmatprep.subr.bf16.mxu1 %v554_v0 }
  0x4e   :  { %411 = vmatpush3.bf16.msra.mxu0 %v410_v19 }
  0x4f   :  { %412 = vmatprep.subr.bf16.mxu0 %v554_v0  ;;  %432 = vmatpush3.bf16.msra.mxu1 %v431_v41 }
  0x50   :  { %433 = vmatprep.subr.bf16.mxu1 %v554_v0 }
  0x52   :  { %414 = vmatpush3.bf16.msra.mxu0 %v413_v22 }
  0x53   :  { %415 = vmatprep.subr.bf16.mxu0 %v554_v0  ;;  %435 = vmatpush3.bf16.msra.mxu1 %v434_v44 }
  0x54   :  { %436 = vmatprep.subr.bf16.mxu1 %v554_v0 }
  0x56   :  { %417 = vmatpush3.bf16.msra.mxu0 %v416_v25 }
  0x57   :  { %438 = vmatpush3.bf16.msra.mxu1 %v437_v47 }
  0x58   :  { %439 = vmatprep.subr.bf16.mxu1 %v554_v0 }
  0x59   :  { %357 = vmatmul.mubr.f32.vlgmr.msra.gmra.mrb[0].mxu0 %v54_v26 }
  0x5b   :  { %441 = vmatpush3.bf16.msra.mxu1 %v440_v50 }
 0x12c   :  { %v137_v51 = vpop.f32.mrb[0].mxu0 }
 0x12d   :  { %v141_v52 = vrot.slane %v137_v51, 4  ;;  %v147_v53 = vmul.f32 %v137_v51, %v137_v51  ;;  %v358_v54 = vpop.f32.mrb[1].mxu0 }
 0x12f   :  { %v142_v55 = vadd.f32 %v141_v52, %v137_v51  ;;  %v148_v56 = vrot.slane %v147_v53, 4 }
 0x131   :  { %v143_v57 = vrot.slane %v142_v55, 2  ;;  %v149_v58 = vadd.f32 %v148_v56, %v147_v53 }
 0x133   :  { %v144_v59 = vadd.f32 %v143_v57, %v142_v55  ;;  %v150_v60 = vrot.slane %v149_v58, 2 }
 0x135   :  { %v145_v61 = vrot.slane %v144_v59, 1  ;;  %v151_v62 = vadd.f32 %v150_v60, %v149_v58 }
 0x137   :  { %v146_v63 = vadd.f32 %v145_v61, %v144_v59  ;;  %v152_v1 = vrot.slane %v151_v62, 1 }
 0x139   :  { %v153_v2 = vadd.f32 %v152_v1, %v151_v62  ;;  %v154_v3 = vmul.f32 0.125, %v146_v63 }
 0x13b   :  { %v155_v4 = vmul.f32 0.125, %v153_v2  ;;  %v156_v5 = vmul.f32 %v154_v3, %v154_v3  ;;  %v159_v8 = vsub.f32 %v137_v51, %v154_v3 }
 0x13d   :  { %v157_v0 = vsub.f32 %v155_v4, %v156_v5 }
 0x13f   :  { %v158_v6 = vmax.f32 %v157_v0, 0.0 }
 0x141   :  { %v160_v7 = vadd.f32 1e-05, %v158_v6 }
 0x143   :  { %451 = vrsqrt.f32 %v160_v7 }
 0x14d   :  { %v452_v9 = vpop.eup %451 }
 0x14e   :  { %v162_v10 = vmul.f32 %v452_v9, %v159_v8 }
 0x150   :  { %v163_v11 = vmax.f32 %v162_v10, 0.0 }
 0x152   :  { %392 = vmatmul.mubr.f32.vlgmr.msra.gmra.mrb[0].mxu1 %v163_v11 }
 0x225   :  { %v246_v12 = vpop.f32.mrb[0].mxu1 }
 0x226   :  { %v250_v13 = vrot.slane %v246_v12, 4  ;;  %v256_v14 = vmul.f32 %v246_v12, %v246_v12  ;;  %v393_v15 = vpop.f32.mrb[1].mxu1 }
 0x228   :  { %v251_v16 = vadd.f32 %v250_v13, %v246_v12  ;;  %v257_v17 = vrot.slane %v256_v14, 4 }
 0x22a   :  { %v252_v18 = vrot.slane %v251_v16, 2  ;;  %v258_v19 = vadd.f32 %v257_v17, %v256_v14 }
 0x22c   :  { %v253_v20 = vadd.f32 %v252_v18, %v251_v16  ;;  %v259_v21 = vrot.slane %v258_v19, 2 }
 0x22e   :  { %v254_v22 = vrot.slane %v253_v20, 1  ;;  %v260_v23 = vadd.f32 %v259_v21, %v258_v19 }
 0x230   :  { %v255_v24 = vadd.f32 %v254_v22, %v253_v20  ;;  %v261_v25 = vrot.slane %v260_v23, 1 }
 0x232   :  { %v262_v26 = vadd.f32 %v261_v25, %v260_v23  ;;  %v263_v27 = vmul.f32 0.125, %v255_v24 }
 0x234   :  { %v264_v28 = vmul.f32 0.125, %v262_v26  ;;  %v265_v29 = vmul.f32 %v263_v27, %v263_v27  ;;  %v268_v33 = vsub.f32 %v246_v12, %v263_v27 }
 0x236   :  { %v266_v30 = vsub.f32 %v264_v28, %v265_v29 }
 0x238   :  { %v267_v31 = vmax.f32 %v266_v30, 0.0 }
 0x23a   :  { %v269_v32 = vadd.f32 1e-05, %v267_v31 }
 0x23c   :  { %453 = vrsqrt.f32 %v269_v32 }
 0x246   :  { %v454_v34 = vpop.eup %453 }
 0x247   :  { %v271_v35 = vmul.f32 %v454_v34, %v268_v33 }
 0x249   :  { %v272_v36 = vmax.f32 %v271_v35, 0.0 }
 0x24b   :  { %273 = vst [vmem:[#allocation8] sm:$0xff] %v272_v36 }
 0x24c   :  { %532 = shalt.err (!%p529_p0)
}
 0x24d   :  { %s533_s25 = scalar_lea.hbm %s651_s3, 128 }
 0x24e   :  { %p534_p1 = scmp.ne.s32.totalorder %s651_s3, %s533_s25  ;;  %p537_p2 = scmp.lt.u32.totalorder %s533_s25, %s651_s3 }
 0x250   :  { %p539_p3 = pnand %p537_p2, %p534_p1 }
 0x252   :  { %542 = shalt.err (!%p539_p3)
}
 0x253   :  { %283 = dma.vmem_to_hbm [thread:$0]  %s281_s21, 128, %s651_s3, [#allocation4]  }
 0x254   :  { %547 = dma.done.wait [#allocation4], 128  }
 0x255   :  { %548 = vsyncadd [#allocation4], 4294967168 }
 0x256   :  { %287 = vsyncpa [#allocation3], 1 }
 0x257   :  { %288 = vsyncpa [#allocation6], 1 }
 0x258   :  { %289 = vsyncpa [#allocation4], 1 }

</bundles_post_ra>
